<compile_context>
chip_gen: v5e
topology: v5e:2x2
jax: 0.10.0
libtpu: 0.0.40
codegen_flags: <defaults>
</compile_context>

<pallas_src>
import functools

import jax
import jax.numpy as jnp
from jax.experimental import pallas as pl
from jax.experimental.pallas import tpu as pltpu

_LANE = 128


def _round_up(n, m):
    return (n + m - 1) // m * m


def _mlp_kernel(x_ref, w1_ref, b1_ref, w2_ref, b2_ref, o_ref):
    # x_ref: (F, Bt), w1_ref: (H, F), b1_ref: (H, 1), w2_ref: (O, H), b2_ref: (O, 1)
    # Layer 1 on the MXU, f32 accumulate: (H, F) @ (F, Bt) -> (H, Bt).
    h = jnp.dot(w1_ref[...], x_ref[...], preferred_element_type=jnp.float32)
    h = h + b1_ref[...]                      # (H, 1) broadcast over lanes
    # Sigmoid via tanh: 1 EUP op + cheap VPU mul/add (vs exp + reciprocal).
    h = 0.5 * (jnp.tanh(0.5 * h) + 1.0)
    # Layer 2 on the MXU: (O, H) @ (H, Bt) -> (O, Bt); single cast at store.
    out = jnp.dot(w2_ref[...], h, preferred_element_type=jnp.float32)
    out = out + b2_ref[...]
    o_ref[...] = out.astype(o_ref.dtype)     # lane-dense store


def prepare_params(w1, b1, w2, b2):
    """One-time parameter prep (hoisted out of the hot path).

    w1: (H, 4) = linear_1.weight (native torch layout, NOT transposed)
    b1: (H,)
    w2: (3, H) = linear_2.weight
    b2: (3,)
    Biases become column vectors (N, 1) so they broadcast across the lane
    (batch) axis inside the kernel.
    """
    return (jnp.asarray(w1, jnp.float32),
            jnp.asarray(b1, jnp.float32).reshape(-1, 1),
            jnp.asarray(w2, jnp.float32),
            jnp.asarray(b2, jnp.float32).reshape(-1, 1))


def _choose_bt(batch, block_b):
    """Pick the batch (lane) tile: big enough to amortize per-step overhead,
    128-aligned, and giving >=2 grid steps for megacore when batch is large."""
    if batch < 2 * _LANE:
        return batch                                   # single full-array block
    bt = min(block_b, _round_up(pl.cdiv(batch, 2), _LANE))
    return max(bt, _LANE)


@functools.partial(jax.jit, static_argnames=("block_b",))
def iris_mlp_forward_bm(x_fb, w1, b1_col, w2, b2_col, *, block_b=65536):
    """Fused 2-layer MLP forward, batch-minor layout.

    Args:
      x_fb:   (4, B)  activations, batch-minor (batch on the lane axis).
      w1:     (H, 4)  linear_1.weight.
      b1_col: (H, 1)  linear_1.bias as a column.
      w2:     (3, H)  linear_2.weight.
      b2_col: (3, 1)  linear_2.bias as a column.
      block_b: batch (lane) tile size.
    Returns:
      (3, B) float32 logits, batch-minor.
    """
    F, B = x_fb.shape
    H = w1.shape[0]
    O = w2.shape[0]

    Bt = _choose_bt(B, block_b)
    grid = (pl.cdiv(B, Bt),)   # ragged last block handled by Pallas (no pad/slice copy)

    return pl.pallas_call(
        _mlp_kernel,
        out_shape=jax.ShapeDtypeStruct((O, B), x_fb.dtype),
        grid=grid,
        in_specs=[
            # Activation tile: streamed per grid step (double-buffered).
            pl.BlockSpec((F, Bt), lambda i: (0, i)),
            # Weights / biases: constant block index -> VMEM-resident, no re-DMA.
            pl.BlockSpec((H, F), lambda i: (0, 0)),
            pl.BlockSpec((H, 1), lambda i: (0, 0)),
            pl.BlockSpec((O, H), lambda i: (0, 0)),
            pl.BlockSpec((O, 1), lambda i: (0, 0)),
        ],
        # Lane-dense output block: full 128-lane vst stores.
        out_specs=pl.BlockSpec((O, Bt), lambda i: (0, i)),
        compiler_params=pltpu.CompilerParams(
            dimension_semantics=("parallel",),      # shard batch across TCs on v7x
            vmem_limit_bytes=32 * 1024 * 1024,      # headroom on v5e; safe on v6e/v7x
        ),
        cost_estimate=pl.CostEstimate(
            flops=2 * B * F * H + 2 * B * H * O,
            transcendentals=B * H,                  # one tanh per hidden element
            bytes_accessed=4 * (B * F + B * O + F * H + H + H * O + O),
        ),
    )(x_fb, w1, b1_col, w2, b2_col)


@functools.partial(jax.jit, static_argnames=("block_b",))
def iris_mlp_forward(x_bf, w1, b1_col, w2, b2_col, *, block_b=65536):
    """Torch-layout convenience wrapper: (B, 4) -> (B, 3).

    NOTE: the transposes here are extra HBM copies; hot-path callers should
    produce batch-minor activations and call iris_mlp_forward_bm directly.
    """
    return iris_mlp_forward_bm(x_bf.T, w1, b1_col, w2, b2_col, block_b=block_b).T


def init_params(key, num_neurons):
    """Deterministic init mimicking torch.nn.Linear (uniform +-1/sqrt(fan_in)),
    in native torch weight layout (out_features, in_features)."""
    k1, k2, k3, k4 = jax.random.split(key, 4)
    in1, out1 = 4, num_neurons
    in2, out2 = num_neurons, 3
    bound1 = 1.0 / jnp.sqrt(jnp.float32(in1))
    bound2 = 1.0 / jnp.sqrt(jnp.float32(in2))
    w1 = jax.random.uniform(k1, (out1, in1), jnp.float32, -bound1, bound1)
    b1 = jax.random.uniform(k2, (out1,), jnp.float32, -bound1, bound1)
    w2 = jax.random.uniform(k3, (out2, in2), jnp.float32, -bound2, bound2)
    b2 = jax.random.uniform(k4, (out2,), jnp.float32, -bound2, bound2)
    return w1, b1, w2, b2


if __name__ == "__main__":
    key = jax.random.PRNGKey(0)
    k_in, k_param = jax.random.split(key)

    batch = 8
    num_neurons = 32  # hidden width, as passed to IrisMLP(num_neurons, ...)

    x = jax.random.normal(k_in, (batch, 4), jnp.float32)
    w1, b1, w2, b2 = init_params(k_param, num_neurons)

    # One-time parameter preparation (outside the hot path).
    w1p, b1p, w2p, b2p = prepare_params(w1, b1, w2, b2)

    out = iris_mlp_forward(x, w1p, b1p, w2p, b2p)
    out = jax.block_until_ready(out)

    # Pure-JAX reference (torch semantics: x @ W.T + b).
    ref = jax.nn.sigmoid(x @ w1.T + b1) @ w2.T + b2
    assert out.shape == (batch, 3)
    assert jnp.allclose(out, ref, atol=1e-5, rtol=1e-5), "mismatch vs reference"

    print("KERNEL_OK")
</pallas_src>

<mosaic_0001>
module attributes {stable_mosaic.version = 11 : i64} {
  func.func @_mlp_kernel(%arg0: i32, %arg1: memref<4x8xf32, #tpu.memory_space<vmem>>, %arg2: memref<32x4xf32, #tpu.memory_space<vmem>>, %arg3: memref<32x1xf32, #tpu.memory_space<vmem>>, %arg4: memref<3x32xf32, #tpu.memory_space<vmem>>, %arg5: memref<3x1xf32, #tpu.memory_space<vmem>>, %arg6: memref<3x8xf32, #tpu.memory_space<vmem>>) attributes {dimension_semantics = [#tpu.dimension_semantics<parallel>], iteration_bounds = array<i64: 1>, scalar_prefetch = 0 : i64, scratch_operands = 0 : i64, tpu.core_type = #tpu.core_type<tc>, window_params = [{transform_indices = @transform_0, window_bounds = array<i64: 4, 8>}, {pipeline_mode = #tpu.pipeline_mode<synchronous>, transform_indices = @transform_1, window_bounds = array<i64: 32, 4>}, {pipeline_mode = #tpu.pipeline_mode<synchronous>, transform_indices = @transform_2, window_bounds = array<i64: 32, 1>}, {pipeline_mode = #tpu.pipeline_mode<synchronous>, transform_indices = @transform_3, window_bounds = array<i64: 3, 32>}, {pipeline_mode = #tpu.pipeline_mode<synchronous>, transform_indices = @transform_4, window_bounds = array<i64: 3, 1>}, {transform_indices = @transform_5, window_bounds = array<i64: 3, 8>}]} {
    %c0 = arith.constant 0 : index
    %c0_0 = arith.constant 0 : index
    %0 = vector.load %arg2[%c0, %c0_0] : memref<32x4xf32, #tpu.memory_space<vmem>>, vector<32x4xf32>
    %c0_1 = arith.constant 0 : index
    %c0_2 = arith.constant 0 : index
    %1 = vector.load %arg1[%c0_1, %c0_2] : memref<4x8xf32, #tpu.memory_space<vmem>>, vector<4x8xf32>
    %cst = arith.constant dense<0.000000e+00> : vector<32x8xf32>
    %2 = tpu.matmul %0, %1, %cst {dimension_numbers = #tpu.dot_dimension_numbers<[1], [0], [0], [1], [0, 0, 1, 1], [], []>} : vector<32x4xf32>, vector<4x8xf32>, vector<32x8xf32> -> vector<32x8xf32>
    %c0_3 = arith.constant 0 : index
    %c0_4 = arith.constant 0 : index
    %3 = vector.load %arg3[%c0_3, %c0_4] : memref<32x1xf32, #tpu.memory_space<vmem>>, vector<32x1xf32>
    %4 = vector.broadcast %3 : vector<32x1xf32> to vector<32x8xf32>
    %5 = arith.addf %2, %4 : vector<32x8xf32>
    %cst_5 = arith.constant 5.000000e-01 : f32
    %6 = vector.broadcast %cst_5 : f32 to vector<32x8xf32>
    %7 = arith.mulf %6, %5 : vector<32x8xf32>
    %8 = math.tanh %7 : vector<32x8xf32>
    %cst_6 = arith.constant 1.000000e+00 : f32
    %9 = vector.broadcast %cst_6 : f32 to vector<32x8xf32>
    %10 = arith.addf %8, %9 : vector<32x8xf32>
    %cst_7 = arith.constant 5.000000e-01 : f32
    %11 = vector.broadcast %cst_7 : f32 to vector<32x8xf32>
    %12 = arith.mulf %11, %10 : vector<32x8xf32>
    %c0_8 = arith.constant 0 : index
    %c0_9 = arith.constant 0 : index
    %13 = vector.load %arg4[%c0_8, %c0_9] : memref<3x32xf32, #tpu.memory_space<vmem>>, vector<3x32xf32>
    %cst_10 = arith.constant dense<0.000000e+00> : vector<3x8xf32>
    %14 = tpu.matmul %13, %12, %cst_10 {dimension_numbers = #tpu.dot_dimension_numbers<[1], [0], [0], [1], [0, 0, 1, 1], [], []>} : vector<3x32xf32>, vector<32x8xf32>, vector<3x8xf32> -> vector<3x8xf32>
    %c0_11 = arith.constant 0 : index
    %c0_12 = arith.constant 0 : index
    %15 = vector.load %arg5[%c0_11, %c0_12] : memref<3x1xf32, #tpu.memory_space<vmem>>, vector<3x1xf32>
    %16 = vector.broadcast %15 : vector<3x1xf32> to vector<3x8xf32>
    %17 = arith.addf %14, %16 : vector<3x8xf32>
    %c0_13 = arith.constant 0 : index
    %c0_14 = arith.constant 0 : index
    %18 = vector.load %arg6[%c0_13, %c0_14] : memref<3x8xf32, #tpu.memory_space<vmem>>, vector<3x8xf32>
    tpu.vector_store %arg6[%c0_13, %c0_14], %17 {strides = array<i32>} : memref<3x8xf32, #tpu.memory_space<vmem>>, vector<3x8xf32>,
    return
  }
  func.func @transform_0(%arg0: i32) -> (i32, i32) {
    %c0_i32 = arith.constant 0 : i32
    %c0_i32_0 = arith.constant 0 : i32
    return %c0_i32, %arg0 : i32, i32
  }
  func.func @transform_1(%arg0: i32) -> (i32, i32) {
    %c0_i32 = arith.constant 0 : i32
    %c0_i32_0 = arith.constant 0 : i32
    %c0_i32_1 = arith.constant 0 : i32
    return %c0_i32, %c0_i32_0 : i32, i32
  }
  func.func @transform_2(%arg0: i32) -> (i32, i32) {
    %c0_i32 = arith.constant 0 : i32
    %c0_i32_0 = arith.constant 0 : i32
    %c0_i32_1 = arith.constant 0 : i32
    return %c0_i32, %c0_i32_0 : i32, i32
  }
  func.func @transform_3(%arg0: i32) -> (i32, i32) {
    %c0_i32 = arith.constant 0 : i32
    %c0_i32_0 = arith.constant 0 : i32
    %c0_i32_1 = arith.constant 0 : i32
    return %c0_i32, %c0_i32_0 : i32, i32
  }
  func.func @transform_4(%arg0: i32) -> (i32, i32) {
    %c0_i32 = arith.constant 0 : i32
    %c0_i32_0 = arith.constant 0 : i32
    %c0_i32_1 = arith.constant 0 : i32
    return %c0_i32, %c0_i32_0 : i32, i32
  }
  func.func @transform_5(%arg0: i32) -> (i32, i32) {
    %c0_i32 = arith.constant 0 : i32
    %c0_i32_0 = arith.constant 0 : i32
    return %c0_i32, %arg0 : i32, i32
  }
}

</mosaic_0001>

<bundles_post_ra>
// kernel: iris_mlp_forward_bm.1
= control target key start
LH: loop header
LB: loop body
LE: loop exit
PB: predicated region body
PF: predicated region fallthrough
CT: control target
= control target key end

     0   :  { %vm63_vm0 = vcmask 1043456   ;;  %vm50_vm1 = vcmask 31744   ;;  %v208_v5 = vmov 0   ;;  %s280_s0 = inlined_call_operand.vmem [shape: f32[4,8], index: 0, kind: input, shape index: {}]   ;;  %s281_s1 = inlined_call_operand.vmem [shape: f32[32,4], index: 1, kind: input, shape index: {}]   ;;  %s282_s2 = inlined_call_operand.vmem [shape: f32[32,1], index: 2, kind: input, shape index: {}]   ;;  %s283_s3 = inlined_call_operand.vmem [shape: f32[3,32], index: 3, kind: input, shape index: {}]   ;;  %s284_s4 = inlined_call_operand.vmem [shape: f32[3,1], index: 4, kind: input, shape index: {}]   ;;  %s285_s5 = inlined_call_operand.hbm [shape: f32[3,8], index: 5, kind: output, shape index: {}]  }
   0x1   :  { %v25_v0 = vld [vmem:[%s280_s0] sm:$0xf]  ;;  %v22_v1 = vld [vmem:[%s281_s1 + $0x8] sm:$0xff]  ;;  %v24_v2 = vld [vmem:[%s281_s1 + $0x18] sm:$0xff]  ;;  %171 = vset.pattern.permute.xlu0 %v208_v5 }
   0x2   :  { %167 = vmatpush.msk.msra.mxu2 %vm63_vm0, %v25_v0  ;;  %168 = vmatpush.msk.msra.mxu3 %vm63_vm0, %v25_v0  ;;  %v29_v3 = vld [vmem:[%s282_s2 + $0x18] sm:$0xff]  ;;  %v21_v4 = vld [vmem:[%s281_s1] sm:$0xff]  ;;  %v27_v6 = vld [vmem:[%s282_s2 + $0x8] sm:$0xff] }
   0x3   :  { %163 = vmatmul.msk.f32.vlgmr.msra.gmra.mxu2 %vm50_vm1, %v22_v1  ;;  %165 = vmatmul.msk.f32.vlgmr.msra.gmra.mxu3 %vm50_vm1, %v24_v2 }
   0x4   :  { %161 = vmatpush.msk.msra.mxu0 %vm63_vm0, %v25_v0 }
   0x5   :  { %10 = vsyncpa [#allocation3], 0  ;;  %47 = vperm.xlu0 %171, %v29_v3   ;;  %162 = vmatmul.msk.f32.vlgmr.msra.gmra.mxu0 %vm50_vm1, %v21_v4  ;;  %v23_v7 = vld [vmem:[%s281_s1 + $0x10] sm:$0xff]  ;;  %v26_v9 = vld [vmem:[%s282_s2] sm:$0xff]  ;;  %vm119_vm2 = vcmask 261120   ;;  %s152_s15 = sshll.u32 %s285_s5, 4  ;;  %s153_s15 = int_to_ptr.hbm [resolvable:$true] %s152_s15 }
   0x6   :  { %172 = vset.pattern.permute.xlu1 %v208_v5  ;;  %173 = vset.pattern.permute.xlu2 %v208_v5  ;;  %v28_v8 = vld [vmem:[%s282_s2 + $0x10] sm:$0xff]  ;;  %v113_v11 = vld [vmem:[%s284_s4] sm:$0x7]  ;;  %s209_s4 = smov [#allocation2]   ;;  %vm143_vm3 = vcmask 59392  }
   0x7   :  { %37 = vperm.xlu1 %172, %v27_v6   ;;  %116 = vperm.xlu2 %173, %v113_v11   ;;  %v112_v39 = vld [vmem:[%s283_s3] sm:$0x7]  ;;  %s150_s12 = sshll.u32 %s209_s4, 4  ;;  %s151_s12 = int_to_ptr.vmem [resolvable:$true] %s150_s12 }
   0xb   :  { %164 = vmatmul.msk.f32.gmra.mxu2 %vm50_vm1, %v23_v7 }
   0xd   :  { %42 = vperm.xlu0 %171, %v28_v8  }
   0xf   :  { %32 = vperm.xlu1 %172, %v26_v9  }
  0x61   :  { %v117_v40 = vpop.permute.xlu2 %116 }
  0x77   :  { %v48_v12 = vpop.permute.xlu0 %47 }
  0x79   :  { %v38_v10 = vpop.permute.xlu1 %37 }
  0x7f   :  { %v43_v22 = vpop.permute.xlu0 %42 }
  0x81   :  { %v33_v16 = vpop.permute.xlu1 %32 }
  0x82   :  { %v84_v17 = vpop.f32.mrf.mxu0 }
  0x83   :  { %v85_v20 = vadd.f32 %v84_v17, %v33_v16 }
  0x85   :  { %v96_v23 = vmul.f32 0.5, %v85_v20 }
  0x86   :  { %v87_v13 = vpop.f32.mrf.mxu2  ;;  %v93_v14 = vpop.f32.mrf.mxu3 }
  0x87   :  { %v94_v15 = vadd.f32 %v93_v14, %v48_v12  ;;  %v88_v18 = vadd.f32 %v87_v13, %v38_v10 }
  0x89   :  { %v99_v19 = vmul.f32 0.5, %v94_v15  ;;  %v97_v21 = vmul.f32 0.5, %v88_v18 }
  0x8b   :  { %174 = vtanh.f32 %v99_v19 }
  0x8c   :  { %176 = vtanh.f32 %v97_v21 }
  0x8d   :  { %178 = vtanh.f32 %v96_v23 }
  0x8e   :  { %v90_v24 = vpop.f32.mrf.mxu2 }
  0x8f   :  { %v91_v25 = vadd.f32 %v90_v24, %v43_v22 }
  0x91   :  { %v98_v26 = vmul.f32 0.5, %v91_v25  ;;  %v175_v27 = vpop.eup %174 }
  0x92   :  { %v107_v28 = vadd.f32 1.0, %v175_v27  ;;  %v177_v30 = vpop.eup %176 }
  0x93   :  { %180 = vtanh.f32 %v98_v26  ;;  %v179_v31 = vpop.eup %178  ;;  %v105_v34 = vadd.f32 1.0, %v177_v30 }
  0x94   :  { %v111_v29 = vmul.f32 0.5, %v107_v28  ;;  %v104_v36 = vadd.f32 1.0, %v179_v31 }
  0x95   :  { %v109_v37 = vmul.f32 0.5, %v105_v34 }
  0x96   :  { %135 = vmatpush.msra.mxu1 %v111_v29  ;;  %v108_v38 = vmul.f32 0.5, %v104_v36 }
  0x99   :  { %v181_v32 = vpop.eup %180 }
  0x9a   :  { %v106_v33 = vadd.f32 1.0, %v181_v32 }
  0x9c   :  { %v110_v35 = vmul.f32 0.5, %v106_v33 }
  0x9e   :  { %136 = vmatpush.msra.mxu1 %v110_v35 }
  0xa0   :  { %137 = vmatpush.msra.mxu1 %v109_v37 }
  0xa2   :  { %138 = vmatpush.msra.mxu1 %v108_v38 }
  0xa3   :  { %166 = vmatmul.msk.f32.vlgmr.msra.gmra.mxu1 %vm119_vm2, %v112_v39 }
 0x120   :  { %v140_v41 = vpop.f32.mrf.mxu1 }
 0x121   :  { %v141_v42 = vadd.f32 %v140_v41, %v117_v40 }
 0x123   :  { %144 = vst.msk [vmem:[#allocation2] sm:$0x7] %vm143_vm3, %v141_v42 }
 0x124   :  { %155 = dma.vmem_to_hbm [thread:$0]  %s151_s12, 64, %s153_s15, [#allocation3]  }
 0x125   :  { %206 = dma.done.wait [#allocation3], 64  }
 0x126   :  { %207 = vsyncadd [#allocation3], 4294967232 }
 0x127   :  { %160 = vsyncpa [#allocation3], 1 }

</bundles_post_ra>
